<compile_context>
chip_gen: v7x
topology: tpu7x:2x2x1
jax: 0.10.0
libtpu: 0.0.40
codegen_flags: <defaults>
</compile_context>

<pallas_src>
import math

import jax
import jax.numpy as jnp
from jax.experimental import pallas as pl
from jax.experimental.pallas import tpu as pltpu


def _pe_kernel(coords_ref, w_ref, out_ref):
    """coords_ref: (tm, 3) f32 rows [x, y, 1]; w_ref: (3, 2F) f32; out_ref: (tm, 2F) f32.

    arg = coords @ W gives  y*(2*pi/dim_t) + phase  in the first F lanes and
    x*(2*pi/dim_t) + phase  in the last F lanes.  Since dim_t[2k] == dim_t[2k+1]
    and sin(p + pi/2) == cos(p), a single sin over the phase-shifted argument
    reproduces the PyTorch interleaved sin/cos exactly.
    """
    arg = jnp.dot(
        coords_ref[...],
        w_ref[...],
        preferred_element_type=jnp.float32,
        precision=jax.lax.Precision.HIGHEST,  # keep full f32 accuracy of the argument
    )
    out_ref[...] = jnp.sin(arg)


def _round_up(v, m):
    return ((v + m - 1) // m) * m


def positional_encoding_sine(x, num_pos_feats=128, temperature=10000.0):
    B, N, C = x.shape
    assert C >= 2, "last dim must hold (x, y) coordinates"
    F = num_pos_feats
    assert F % 2 == 0, "num_pos_feats must be even (sin/cos pairing)"
    scale = 2.0 * math.pi
    M = B * N

    # Glue (all cheap / fused by XLA): flatten rows and append a ones column so
    # the phase add folds into the matmul.
    coords = x[..., :2].astype(jnp.float32).reshape(M, 2)
    coords_aug = jnp.concatenate(
        [coords, jnp.ones((M, 1), jnp.float32)], axis=1)          # (M, 3)

    # Constant weight matrix (3, 2F): row0 (x) -> pos_x half (last F lanes),
    # row1 (y) -> pos_y half (first F lanes), row2 (ones) -> phase everywhere.
    i = jnp.arange(F, dtype=jnp.float32)
    dim_t = temperature ** (2.0 * jnp.floor(i / 2.0) / F)
    inv = scale / dim_t                                            # 2*pi folded in
    phase = (i % 2.0) * (math.pi / 2.0)                            # odd lanes -> cos
    zeros = jnp.zeros_like(inv)
    w = jnp.stack(
        [jnp.concatenate([zeros, inv]),
         jnp.concatenate([inv, zeros]),
         jnp.concatenate([phase, phase])], axis=0)                 # (3, 2F)

    # Tile selection: big tiles amortize the ~0.35 us/grid-step overhead, but
    # cap so the grid keeps >= 4 steps (v7x megacore sharding of "parallel").
    TM = 2048
    tm = max(8, min(TM, _round_up(pl.cdiv(M, 4), 8)))
    grid = (pl.cdiv(M, tm),)   # ragged last block handled by Pallas; no pad/slice

    cost = pl.CostEstimate(
        flops=2 * M * 3 * (2 * F),                                 # (M,3)x(3,2F) matmul
        transcendentals=2 * M * F,                                 # one sin per output elem
        bytes_accessed=M * 3 * 4 + 3 * 2 * F * 4 + M * 2 * F * 4,
    )

    out = pl.pallas_call(
        _pe_kernel,
        out_shape=jax.ShapeDtypeStruct((M, 2 * F), jnp.float32),
        grid_spec=pltpu.PrefetchScalarGridSpec(
            num_scalar_prefetch=0,
            grid=grid,
            in_specs=[
                pl.BlockSpec((tm, 3), lambda i: (i, 0)),
                pl.BlockSpec((3, 2 * F), lambda i: (0, 0)),
            ],
            out_specs=pl.BlockSpec((tm, 2 * F), lambda i: (i, 0)),
        ),
        compiler_params=pltpu.CompilerParams(
            dimension_semantics=("parallel",)),
        cost_estimate=cost,
    )(coords_aug, w)

    return out.reshape(B, N, 2 * F)   # contiguous reshape, no copy


def _reference(x, num_pos_feats=128, temperature=10000.0):
    """Pure-JAX transliteration of the PyTorch forward, for verification."""
    scale = 2.0 * math.pi
    i = jnp.arange(num_pos_feats, dtype=jnp.float32)
    dim_t = temperature ** (2.0 * jnp.floor(i / 2.0) / num_pos_feats)
    x_embed = x[:, :, 0] * scale
    y_embed = x[:, :, 1] * scale
    pos_x = x_embed[:, :, None] / dim_t
    pos_y = y_embed[:, :, None] / dim_t
    px = jnp.stack((jnp.sin(pos_x[:, :, 0::2]), jnp.cos(pos_x[:, :, 1::2])),
                   axis=3).reshape(x.shape[0], x.shape[1], -1)
    py = jnp.stack((jnp.sin(pos_y[:, :, 0::2]), jnp.cos(pos_y[:, :, 1::2])),
                   axis=3).reshape(x.shape[0], x.shape[1], -1)
    return jnp.concatenate((py, px), axis=2)


if __name__ == "__main__":
    key = jax.random.PRNGKey(0)

    # Small case (single sublane-sized tile, grid of 2).
    B, N = 2, 8
    x = jax.random.uniform(key, (B, N, 2), dtype=jnp.float32)  # normalized (x, y)
    out = jax.block_until_ready(
        positional_encoding_sine(x, num_pos_feats=128, temperature=10000.0))
    ref = _reference(x, num_pos_feats=128, temperature=10000.0)
    assert out.shape == (B, N, 256), out.shape
    assert jnp.allclose(out, ref, atol=1e-5, rtol=1e-5), "mismatch vs reference (small)"

    # Multi-tile case exercising the ragged last block (M = 1200, tm = 304, grid = 4).
    x2 = jax.random.uniform(jax.random.PRNGKey(0), (2, 600, 2), dtype=jnp.float32)
    out2 = jax.block_until_ready(positional_encoding_sine(x2))
    ref2 = _reference(x2)
    assert out2.shape == (2, 600, 256), out2.shape
    assert jnp.allclose(out2, ref2, atol=1e-5, rtol=1e-5), "mismatch vs reference (tiled)"

    print("KERNEL_OK")
</pallas_src>

<mosaic_0001>
module attributes {stable_mosaic.version = 11 : i64} {
  func.func @_pe_kernel(%arg0: i32, %arg1: memref<8x3xf32, #tpu.memory_space<vmem>>, %arg2: memref<3x256xf32, #tpu.memory_space<vmem>>, %arg3: memref<8x256xf32, #tpu.memory_space<vmem>>) attributes {dimension_semantics = [#tpu.dimension_semantics<parallel>], iteration_bounds = array<i64: 2>, scalar_prefetch = 0 : i64, scratch_operands = 0 : i64, tpu.core_type = #tpu.core_type<tc>, window_params = [{transform_indices = @transform_0, window_bounds = array<i64: 8, 3>}, {pipeline_mode = #tpu.pipeline_mode<synchronous>, transform_indices = @transform_1, window_bounds = array<i64: 3, 256>}, {transform_indices = @transform_2, window_bounds = array<i64: 8, 256>}]} {
    %c0 = arith.constant 0 : index
    %c0_0 = arith.constant 0 : index
    %0 = vector.load %arg1[%c0, %c0_0] : memref<8x3xf32, #tpu.memory_space<vmem>>, vector<8x3xf32>
    %c0_1 = arith.constant 0 : index
    %c0_2 = arith.constant 0 : index
    %1 = vector.load %arg2[%c0_1, %c0_2] : memref<3x256xf32, #tpu.memory_space<vmem>>, vector<3x256xf32>
    %cst = arith.constant dense<0.000000e+00> : vector<8x256xf32>
    %2 = tpu.matmul %0, %1, %cst {dimension_numbers = #tpu.dot_dimension_numbers<[1], [0], [0], [1], [0, 0, 1, 1], [], []>, precision = #tpu.contract_precision<fp32>} : vector<8x3xf32>, vector<3x256xf32>, vector<8x256xf32> -> vector<8x256xf32>
    %3 = math.sin %2 : vector<8x256xf32>
    %c0_3 = arith.constant 0 : index
    %c0_4 = arith.constant 0 : index
    %4 = vector.load %arg3[%c0_3, %c0_4] : memref<8x256xf32, #tpu.memory_space<vmem>>, vector<8x256xf32>
    tpu.vector_store %arg3[%c0_3, %c0_4], %3 {strides = array<i32>} : memref<8x256xf32, #tpu.memory_space<vmem>>, vector<8x256xf32>,
    return
  }
  func.func @transform_0(%arg0: i32) -> (i32, i32) {
    %c0_i32 = arith.constant 0 : i32
    %c0_i32_0 = arith.constant 0 : i32
    return %arg0, %c0_i32 : i32, i32
  }
  func.func @transform_1(%arg0: i32) -> (i32, i32) {
    %c0_i32 = arith.constant 0 : i32
    %c0_i32_0 = arith.constant 0 : i32
    %c0_i32_1 = arith.constant 0 : i32
    return %c0_i32, %c0_i32_0 : i32, i32
  }
  func.func @transform_2(%arg0: i32) -> (i32, i32) {
    %c0_i32 = arith.constant 0 : i32
    %c0_i32_0 = arith.constant 0 : i32
    return %arg0, %c0_i32 : i32, i32
  }
}

</mosaic_0001>

<bundles_post_ra>
// kernel: tpu_custom_call.1
= control target key start
LH: loop header
LB: loop body
LE: loop exit
PB: predicated region body
PF: predicated region fallthrough
CT: control target
= control target key end

     0   :  { %7 = vsyncpa [#allocation3], 0  ;;  %s1258_s0 = inlined_call_operand.vmem [shape: f32[16,3], index: 0, kind: input, shape index: {}]   ;;  %s1259_s1 = inlined_call_operand.vmem [shape: f32[3,256], index: 1, kind: input, shape index: {}]   ;;  %s1260_s2 = inlined_call_operand.hbm [shape: f32[16,256], index: 2, kind: output, shape index: {}]  }
   0x1   :  { %9 = vsyncpa [#allocation3 + $0x1], 0  ;;  %s1081_s9 = smov 0   ;;  %s1083_s10 = smov 0  }
   0x2   :  { %s1085_s11 = smov 0   ;;  %s1087_s12 = smov 0  }
   0x3 LB: > { %s1102_s13 = sadd.s32 4294967295, %s1056_s12   ;;  %s901_s14 = sadd.s32 4294967294, %s1056_s12   ;;  %s1056_s12 = sphi %s1087_s12, %s1268_s12   ;;  %s1052_s11 = sphi %s1085_s11, %s1267_s11   ;;  %s1048_s10 = sphi %s1083_s10, %s1266_s10   ;;  %s1044_s9 = sphi %s1081_s9, %s1265_s9  }
   0x4   : > { %s1106_s15 = sadd.s32 1, %s1056_s12   ;;  %s69_s16 = sadd.s32 1, %s1052_s11 }
   0x5   : > { %s66_s17 = ssub.s32 %s1056_s12, %s1106_s15  ;;  %p79_p0 = scmp.ne.s32.totalorder %s1052_s11, %s1048_s10 }
   0x6   : > { %p67_p1 = scmp.eq.s32.totalorder %s66_s17, 0  ;;  %p80_p2 = scmp.eq.s32.totalorder %s1102_s13, 1 }
   0x7   : > { %p85_p3 = scmp.ne.s32.totalorder %s1048_s10, %s1044_s9  ;;  %p86_p4 = scmp.eq.s32.totalorder %s901_s14, 1 }
   0x8   : > { %s1117_s18 = scalar_select %p67_p1, %s1052_s11, %s69_s16  }
   0x9   : > { %p1119_p5 = por %p80_p2, %p79_p0  ;;  %p1123_p6 = por %p86_p4, %p85_p3 }
   0xa   : > { %p904_p7 = scmp.ge.s32.totalorder %s1056_s12, 1  ;;  %p114_p8 = scmp.lt.s32.totalorder %s1056_s12, 3 }
   0xc   : > { %p115_p9 = pnand %p904_p7, %p114_p8 }
   0xd   : > { %v140_v0 = vld [vmem:[%s1259_s1] sm:$0x77] (!%p115_p9)  ;;  %vm147_vm0 = vcmask (!%p115_p9), 1042432   ;;  %p135_p10 = scmp.lt.s32.totalorder (!%p115_p9), %s1102_s13, 1  ;;  %v1058_v3 = vmov (!%p115_p9), 0.0   ;;  %vm143_vm1 = vcmask (!%p115_p9), 23552  }
   0xe   : > { %118 = sbr.rel (%p115_p9) target bundleno = 370 (0x172), region = 28  ;;  %v142_v1 = vcombine.high (!%p115_p9), %v140_v0, %v140_v0  ;;  %v148_v2 = vsel (!%p115_p9), %vm147_vm0, %v140_v0, 0  ;;  %455 = vmatprep.mubr.f32.mxu0 (!%p115_p9), %v1058_v3  ;;  %218 = vmatprep.mubr.f32.mxu1 (!%p115_p9), %v1058_v3  ;;  %v1059_v48 = vmov (!%p115_p9), 683565275   ;;  %v1060_v52 = vmov (!%p115_p9), 2475754826  }
   0xf   : > { %v154_v4 = vand.u32 (!%p115_p9), 4294901760, %v148_v2  ;;  %v1061_v54 = vmov (!%p115_p9), 2131351028   ;;  %v1062_v56 = vmov (!%p115_p9), 2102212464   ;;  %s132_s28 = sand.u32 (!%p115_p9), 1, %s1048_s10  }
  0x10   : > { %v150_v5 = vsel (!%p115_p9), %vm147_vm0, %v142_v1, 0  ;;  %v1063_v58 = vmov (!%p115_p9), 920167782   ;;  %v1064_v1 = vmov (!%p115_p9), 1326507024   ;;  %s905_s29 = sshll.u32 (!%p115_p9), %s132_s28, 4 }
  0x11   : > { %v152_v6 = vand.u32 (!%p115_p9), 4294901760, %v150_v5  ;;  %v237_v7 = vsub.f32 (!%p115_p9), %v148_v2, %v154_v4  ;;  %s134_s30 = scalar_lea.vmem (!%p115_p9), [#allocation2], %s905_s29  ;;  %s920_s3 = sshll.u32 (!%p115_p9), %s1102_s13, 8 }
  0x12   : > { %s842_s4 = sshll.u32 (!%p115_p9), %s134_s30, 4  ;;  %s1214_s7 = scalar_lea.hbm (!%p115_p9), %s1260_s2, %s920_s3  ;;  %s1216_s4 = int_to_ptr.vmem [resolvable:$true] %s842_s4 }
  0x13   : > { %390 = vmatprep.subr.mxu0 (!%p115_p9), %v152_v6  ;;  %153 = vmatprep.subr.mxu1 (!%p115_p9), %v152_v6  ;;  %v231_v9 = vsub.f32 (!%p115_p9), %v150_v5, %v152_v6  ;;  %v238_v11 = vand.u32 (!%p115_p9), 4294901760, %v237_v7  ;;  %s828_s8 = scalar_lea.sflag (!%p115_p9), [#allocation3], %s132_s28  ;;  %s1065_s14 = smov (!%p115_p9), [#allocation2]  }
  0x14   : > { %392 = vmatpush1.msra.mxu0 (!%p115_p9), %v154_v4  ;;  %155 = vmatpush1.msra.mxu1 (!%p115_p9), %v154_v4  ;;  %s998_s16 = sshll.u32 (!%p115_p9), %s1065_s14, 4  ;;  %s999_s16 = int_to_ptr.vmem [resolvable:$false] %s998_s16 }
  0x15   : > { %s136_s23 = scalar_select %p135_p10, %s1102_s13, 1  ;;  %v232_v13 = vand.u32 4294901760, %v231_v9  ;;  %v239_v16 = vsub.f32 %v237_v7, %v238_v11 }
  0x16   : > { %s994_s13 = scalar_lea.vmem %s1216_s4, 256  ;;  %s1000_s17 = scalar_lea.vmem %s999_s16, 512 }
  0x17   : > { %s906_s24 = sshll.u32 %s136_s23, 3  ;;  %v233_v15 = vsub.f32 %v231_v9, %v232_v13  ;;  %468 = vmatprep.subr.mxu0 %v232_v13  ;;  %v240_v20 = vand.u32 4294901760, %v239_v16  ;;  %p995_p11 = scmp.ne.s32.totalorder %s1216_s4, %s994_s13 }
  0x18   : > { %s138_s27 = scalar_lea.vmem %s1258_s0, %s906_s24  ;;  %p1001_p0 = scmp.lt.s32.totalorder %s1216_s4, %s999_s16 }
  0x19   : > { %v139_v8 = vld [vmem:[%s138_s27] sm:$0xff]  ;;  %v234_v18 = vand.u32 4294901760, %v233_v15  ;;  %p996_p12 = pnand %p995_p11, %p1119_p5  ;;  %p1002_p1 = scmp.lt.s32.totalorder %s1000_s17, %s994_s13 }
  0x1a   : > { %v145_v10 = vsel %vm143_vm1, %v139_v8, 0 }
  0x1b   : > { %v219_v12 = vand.u32 4294901760, %v145_v10  ;;  %235 = vmatprep.subr.mxu1 %v234_v18  ;;  %p997_p13 = pneg %p996_p12  ;;  %p1003_p2 = por %p1002_p1, %p1001_p0 }
  0x1d   : > { %v220_v14 = vsub.f32 %v145_v10, %v219_v12  ;;  %p1004_p3 = pnand %p1003_p2, %p997_p13 }
  0x1f   : > { %v221_v17 = vand.u32 4294901760, %v220_v14 }
  0x21   : > { %459 = vmatmul.mubr.f32.vlgmr.msra.gmra.mrb[0].mxu0 %v221_v17  ;;  %v222_v19 = vsub.f32 %v220_v14, %v221_v17 }
  0x22   : > { %472 = vmatpush1.msra.mxu0 %v238_v11  ;;  %535 = vmatprep.mubr.f32.mxu0 %v1058_v3 }
  0x23   : > { %v223_v21 = vand.u32 4294901760, %v222_v19  ;;  %544 = vmatprep.subr.mxu0 %v152_v6 }
  0x25   : > { %224 = vmatmul.mubr.f32.vlgmr.msra.gmra.mrb[0].mxu1 %v223_v21 }
  0x26   : > { %241 = vmatpush1.msra.mxu1 %v240_v20  ;;  %304 = vmatprep.mubr.f32.mxu1 %v1058_v3 }
  0x27   : > { %314 = vmatprep.subr.mxu1 %v231_v9 }
  0x29   : > { %537 = vmatmul.mubr.f32.vlgmr.msra.gmra.mrb[0].mxu0 %v219_v12 }
  0x2a   : > { %546 = vmatpush1.msra.mxu0 %v154_v4  ;;  %609 = vmatprep.mubr.f32.mxu0 %v1058_v3 }
  0x2d   : > { %306 = vmatmul.mubr.f32.vlgmr.msra.gmra.mrb[0].mxu1 %v219_v12 }
  0x2e   : > { %317 = vmatpush1.msra.mxu1 %v237_v7  ;;  %380 = vmatprep.mubr.f32.mxu1 %v1058_v3 }
  0x31   : > { %611 = vmatmul.mubr.f32.vlgmr.msra.gmra.mrb[0].mxu0 %v219_v12 }
  0x35   : > { %383 = vmatmul.mubr.f32.vlgmr.msra.gmra.mrb[0].mxu1 %v220_v14 }
 0x104   : > { %v612_v22 = vpop.f32.mrb[0].mxu0 }
 0x105   : > { %v614_v23 = vpop.f32.mrb[1].mxu0 }
 0x108   : > { %v384_v24 = vpop.f32.mrb[0].mxu1 }
 0x109   : > { %v1137_v25 = vadd.f32 %v612_v22, %v384_v24  ;;  %v386_v26 = vpop.f32.mrb[1].mxu1 }
 0x10a   : > { %v1139_v27 = vadd.f32 %v614_v23, %v386_v26 }
 0x10b   : > { %v617_v28 = vand.u32 2147483647, %v1137_v25  ;;  %v620_v29 = vand.u32 2139095040, %v1137_v25  ;;  %vm619_vm0 = vcmp.lt.s32.totalorder %v1137_v25, 0 }
 0x10c   : > { %v724_v30 = vand.u32 2139095040, %v1139_v27  ;;  %v721_v33 = vand.u32 2147483647, %v1139_v27 }
 0x10d   : > { %v621_v31 = vshrl.u32 %v620_v29, 23  ;;  %v624_v32 = vand.u32 8388607, %v617_v28  ;;  %vm618_vm1 = vcmp.le.f32.partialorder %v617_v28, 0.7853982 }
 0x10e   : > { %v725_v34 = vshrl.u32 %v724_v30, 23  ;;  %v1149_v39 = vand.u32 8388607, %v721_v33 }
 0x10f   : > { %v907_v35 = vadd.s32 4294967169, %v621_v31  ;;  %v625_v38 = vor.u32 8388608, %v624_v32 }
 0x110   : > { %v911_v36 = vadd.s32 4294967169, %v725_v34  ;;  %v729_v46 = vor.u32 8388608, %v1149_v39 }
 0x111   : > { %v627_v37 = vadd.s32 1, %v907_v35  ;;  %v1151_v45 = vshll.u32 %v625_v38, 8 }
 0x112   : > { %v731_v40 = vadd.s32 1, %v911_v36 }
 0x113   : > { %vm628_vm2 = vcmp.gt.s32.totalorder %v627_v37, 0 }
 0x114   : > { %v629_v41 = vsel %vm628_vm2, %v627_v37, 0  ;;  %vm732_vm3 = vcmp.gt.s32.totalorder %v731_v40, 0  ;;  %vm723_vm2 = vcmp.lt.s32.totalorder %v1139_v27, 0 }
 0x115   : > { %v630_v42 = vshrl.u32 %v629_v41, 5  ;;  %v631_v43 = vand.u32 31, %v629_v41  ;;  %v733_v44 = vsel %vm732_vm3, %v731_v40, 0  ;;  %v769_v40 = vshll.u32 %v729_v46, 8 }
 0x116   : > { %v1154_v50 = vshrl.u32 %v733_v44, 5  ;;  %v735_v51 = vand.u32 31, %v733_v44  ;;  %vm1196_vm3 = vcmp.le.f32.partialorder %v721_v33, 0.7853982 }
 0x117   : > { %v632_v47 = vsub.s32 32, %v631_v43  ;;  %v634_v49 = vshll.u32 %v1059_v48, %v631_v43  ;;  %v637_v53 = vshll.u32 %v1060_v52, %v631_v43  ;;  %v640_v55 = vshll.u32 %v1061_v54, %v631_v43 }
 0x118   : > { %v643_v57 = vshll.u32 %v1062_v56, %v631_v43  ;;  %v646_v59 = vshll.u32 %v1063_v58, %v631_v43  ;;  %vm649_vm4 = vcmp.lt.s32.totalorder %v630_v42, 1  ;;  %vm650_vm5 = vcmp.lt.s32.totalorder %v630_v42, 2 }
 0x119   : > { %v635_v60 = vshrl.u32 %v1060_v52, %v632_v47  ;;  %v638_v61 = vshrl.u32 %v1061_v54, %v632_v47  ;;  %v641_v62 = vshrl.u32 %v1062_v56, %v632_v47  ;;  %v633_v63 = vshrl.u32 %v1059_v48, %v632_v47 }
 0x11a   : > { %v644_v0 = vshrl.u32 %v1063_v58, %v632_v47  ;;  %v647_v2 = vshrl.u32 %v1064_v1, %v632_v47  ;;  %v736_v6 = vsub.s32 32, %v735_v51  ;;  %vm651_vm6 = vcmp.lt.s32.totalorder %v630_v42, 3 }
 0x11b   : > { %v636_v3 = vor.u32 %v635_v60, %v634_v49  ;;  %v639_v4 = vor.u32 %v638_v61, %v637_v53  ;;  %v642_v5 = vor.u32 %v641_v62, %v640_v55  ;;  %vm652_vm7 = vcmp.lt.s32.totalorder %v630_v42, 4 }
 0x11c   : > { %v645_v7 = vor.u32 %v644_v0, %v643_v57  ;;  %v648_v8 = vor.u32 %v647_v2, %v646_v59  ;;  %v738_v16 = vshll.u32 %v1059_v48, %v735_v51  ;;  %v739_v19 = vshrl.u32 %v1060_v52, %v736_v6 }
 0x11d   : > { %v653_v9 = vsel %vm649_vm4, %v633_v63, %v636_v3  ;;  %v654_v10 = vsel %vm652_vm7, %v642_v5, 2102212464  ;;  %v657_v11 = vsel %vm649_vm4, %v636_v3, %v639_v4  ;;  %v661_v12 = vsel %vm649_vm4, %v639_v4, %v642_v5 }
 0x11e   : > { %v655_v13 = vsel %vm651_vm6, %v639_v4, %v654_v10  ;;  %v658_v14 = vsel %vm652_vm7, %v645_v7, 920167782  ;;  %v662_v15 = vsel %vm652_vm7, %v648_v8, 1326507024  ;;  %v741_v20 = vshll.u32 %v1060_v52, %v735_v51 }
 0x11f   : > { %v659_v17 = vsel %vm651_vm6, %v642_v5, %v658_v14  ;;  %v663_v18 = vsel %vm651_vm6, %v645_v7, %v662_v15  ;;  %v656_v21 = vsel %vm650_vm5, %v653_v9, %v655_v13  ;;  %v742_v24 = vshrl.u32 %v1061_v54, %v736_v6 }
 0x120   : > { %v660_v22 = vsel %vm650_vm5, %v657_v11, %v659_v17  ;;  %v664_v23 = vsel %vm650_vm5, %v661_v12, %v663_v18  ;;  %v740_v32 = vor.u32 %v739_v19, %v738_v16  ;;  %v744_v35 = vshll.u32 %v1061_v54, %v735_v51 }
 0x121   : > { %v1163_v26 = vmul.u32.u64.low %v1151_v45, %v664_v23  ;;  %v1164_v29 = vmul.u32.u64.high %v1151_v45, %v664_v23, %v1163_v26  ;;  %v1167_v30 = vmul.u32.u64.low %v1151_v45, %v660_v22  ;;  %v1168_v31 = vmul.u32.u64.high %v1151_v45, %v660_v22, %v1167_v30 }
 0x122   : > { %v743_v34 = vor.u32 %v742_v24, %v741_v20  ;;  %v745_v36 = vshrl.u32 %v1062_v56, %v736_v6  ;;  %v747_v37 = vshll.u32 %v1062_v56, %v735_v51  ;;  %v748_v38 = vshrl.u32 %v1063_v58, %v736_v6 }
 0x123   : > { %v751_v39 = vshrl.u32 %v1064_v1, %v736_v6  ;;  %v672_v41 = vmul.u32 %v1151_v45, %v656_v21  ;;  %v737_v42 = vshrl.u32 %v1059_v48, %v736_v6  ;;  %v750_v44 = vshll.u32 %v1063_v58, %v735_v51 }
 0x124   : > { %v746_v43 = vor.u32 %v745_v36, %v744_v35  ;;  %vm674_vm8 = vc.u32 %v1164_v29, %v1167_v30  ;;  %v675_v47 = vadd.s32 1, %v1168_v31  ;;  %v749_v49 = vor.u32 %v748_v38, %v747_v37 }
 0x125   : > { %vm753_vm9 = vcmp.lt.s32.totalorder %v1154_v50, 1  ;;  %v752_v52 = vor.u32 %v751_v39, %v750_v44  ;;  %vm755_vm10 = vcmp.lt.s32.totalorder %v1154_v50, 3  ;;  %vm756_vm11 = vcmp.lt.s32.totalorder %v1154_v50, 4 }
 0x126   : > { %v761_v53 = vsel %vm753_vm9, %v740_v32, %v743_v34  ;;  %v676_v46 = vsel %vm674_vm8, %v675_v47, %v1168_v31  ;;  %v758_v54 = vsel %vm756_vm11, %v746_v43, 2102212464  ;;  %v762_v45 = vsel %vm756_vm11, %v749_v49, 920167782 }
 0x127   : > { %v765_v48 = vsel %vm753_vm9, %v743_v34, %v746_v43  ;;  %v677_v55 = vadd.s32 %v676_v46, %v672_v41  ;;  %vm754_vm12 = vcmp.lt.s32.totalorder %v1154_v50, 2  ;;  %v763_v51 = vsel %vm755_vm10, %v746_v43, %v762_v45 }
 0x128   : > { %v766_v56 = vsel %vm756_vm11, %v752_v52, 1326507024  ;;  %v757_v57 = vsel %vm753_vm9, %v737_v42, %v740_v32  ;;  %v759_v58 = vsel %vm755_vm10, %v743_v34, %v758_v54  ;;  %v764_v59 = vsel %vm754_vm12, %v761_v53, %v763_v51 }
 0x129   : > { %v767_v60 = vsel %vm755_vm10, %v749_v49, %v766_v56  ;;  %v678_v61 = vadd.s32 536870912, %v677_v55  ;;  %v1178_v63 = vmul.u32.u64.low %v769_v40, %v764_v59  ;;  %v1179_v0 = vmul.u32.u64.high %v769_v40, %v764_v59, %v1178_v63 }
 0x12a   : > { %v768_v62 = vsel %vm754_vm12, %v765_v48, %v767_v60  ;;  %v760_v4 = vsel %vm754_vm12, %v757_v57, %v759_v58  ;;  %v673_v20 = vadd.s32 %v1167_v30, %v1164_v29  ;;  %vm709_vm7 = vweird.f32 %v1137_v25 }
 0x12b   : > { %v1181_v1 = vmul.u32.u64.low %v769_v40, %v768_v62  ;;  %v1182_v2 = vmul.u32.u64.high %v769_v40, %v768_v62, %v1181_v1  ;;  %v679_v3 = vshrl.u32 %v678_v61, 30  ;;  %v779_v6 = vadd.s32 1, %v1179_v0 }
 0x12c   : > { %v776_v50 = vmul.u32 %v769_v40, %v760_v4  ;;  %vm813_vm11 = vweird.f32 %v1139_v27 }
 0x12d   : > { %v680_v5 = vshll.u32 %v679_v3, 30  ;;  %vm778_vm13 = vc.u32 %v1182_v2, %v1178_v63  ;;  %v777_v41 = vadd.s32 %v1178_v63, %v1182_v2  ;;  %v703_v30 = vsub.s32 4, %v679_v3 }
 0x12e   : > { %v780_v8 = vsel %vm778_vm13, %v779_v6, %v1179_v0 }
 0x12f   : > { %v681_v7 = vsub.s32 %v677_v55, %v680_v5  ;;  %v781_v9 = vadd.s32 %v780_v8, %v776_v50  ;;  %v704_v45 = vsel %vm619_vm0, %v703_v30, %v679_v3 }
 0x130   : > { %v706_v57 = vsel %vm618_vm1, 0, %v704_v45 }
 0x131   : > { %v683_v10 = vsub.s32 0, %v681_v7  ;;  %v782_v11 = vadd.s32 536870912, %v781_v9  ;;  %v710_v60 = vadd.s32 3, %v706_v57 }
 0x133   : > { %v908_v12 = vmin.u32 %v683_v10, %v681_v7  ;;  %v783_v13 = vshrl.u32 %v782_v11, 30  ;;  %v711_v1 = vand.u32 3, %v710_v60 }
 0x135   : > { %v685_v14 = vclz %v908_v12  ;;  %v784_v15 = vshll.u32 %v783_v13, 30  ;;  %v807_v59 = vsub.s32 4, %v783_v13  ;;  %vm716_vm4 = vcmp.eq.s32.totalorder %v711_v1, 2 }
 0x136   : > { %vm713_vm5 = vcmp.eq.s32.totalorder %v711_v1, 0  ;;  %vm712_vm6 = vcmp.lt.s32.totalorder %v711_v1, 2 }
 0x137   : > { %v909_v16 = vadd.s32 4294967294, %v685_v14  ;;  %v785_v17 = vsub.s32 %v781_v9, %v784_v15  ;;  %v808_v63 = vsel %vm723_vm2, %v807_v59, %v783_v13 }
 0x138   : > { %v810_v3 = vsel %vm1196_vm3, 0, %v808_v63 }
 0x139   : > { %vm910_vm14 = vcmp.lt.s32.totalorder %v909_v16, 0  ;;  %v787_v19 = vsub.s32 0, %v785_v17  ;;  %v814_v50 = vadd.s32 3, %v810_v3 }
 0x13a   : > { %v688_v18 = vsel %vm910_vm14, 0, %v909_v16 }
 0x13b   : > { %v689_v21 = vsub.s32 32, %v688_v18  ;;  %v693_v22 = vsub.s32 4294967266, %v688_v18  ;;  %v912_v23 = vmin.u32 %v787_v19, %v785_v17  ;;  %v690_v24 = vshll.u32 %v681_v7, %v688_v18 }
 0x13c   : > { %v815_v10 = vand.u32 3, %v814_v50 }
 0x13d   : > { %v691_v26 = vshrl.u32 %v673_v20, %v689_v21  ;;  %v694_v31 = vadd.s32 127, %v693_v22  ;;  %v789_v32 = vclz %v912_v23 }
 0x13e   : > { %vm820_vm8 = vcmp.eq.s32.totalorder %v815_v10, 2  ;;  %vm817_vm9 = vcmp.eq.s32.totalorder %v815_v10, 0  ;;  %vm816_vm10 = vcmp.lt.s32.totalorder %v815_v10, 2 }
 0x13f   : > { %v692_v34 = vor.u32 %v691_v26, %v690_v24  ;;  %v695_v35 = vshll.u32 %v694_v31, 23  ;;  %v913_v36 = vadd.s32 4294967294, %v789_v32 }
 0x141   : > { %v696_v37 = vor.u32 4788187, %v695_v35  ;;  %vm914_vm15 = vcmp.lt.s32.totalorder %v913_v36, 0  ;;  %v699_v39 = vcvt.s32.f32 %v692_v34 }
 0x142   : > { %v792_v40 = vsel %vm914_vm15, 0, %v913_v36 }
 0x143   : > { %v697_v38 = vand.u32 2147483647, %v696_v37  ;;  %v793_v42 = vsub.s32 32, %v792_v40  ;;  %v797_v43 = vsub.s32 4294967266, %v792_v40  ;;  %v794_v44 = vshll.u32 %v785_v17, %v792_v40 }
 0x145   : > { %v700_v29 = vmul.f32 %v699_v39, %v697_v38  ;;  %v795_v47 = vshrl.u32 %v777_v41, %v793_v42  ;;  %v798_v49 = vadd.s32 127, %v797_v43 }
 0x147   : > { %v701_v52 = vxor.u32 2147483648, %v700_v29  ;;  %v796_v53 = vor.u32 %v795_v47, %v794_v44  ;;  %v799_v46 = vshll.u32 %v798_v49, 23 }
 0x149   : > { %v702_v54 = vsel %vm619_vm0, %v701_v52, %v700_v29  ;;  %v800_v55 = vor.u32 4788187, %v799_v46  ;;  %v803_v56 = vcvt.s32.f32 %v796_v53 }
 0x14a   : > { %v705_v48 = vsel %vm618_vm1, %v1137_v25, %v702_v54 }
 0x14b   : > { %986 = vcosq.f32 %v705_v48  ;;  %v801_v51 = vand.u32 2147483647, %v800_v55 }
 0x14c   : > { %988 = vsinq.f32 %v705_v48 }
 0x14d   : > { %v804_v58 = vmul.f32 %v803_v56, %v801_v51 }
 0x14f   : > { %v805_v61 = vxor.u32 2147483648, %v804_v58 }
 0x151   : > { %v806_v62 = vsel %vm723_vm2, %v805_v61, %v804_v58 }
 0x152   : > { %v809_v0 = vsel %vm1196_vm3, %v1139_v27, %v806_v62 }
 0x153   : > { %990 = vcosq.f32 %v809_v0 }
 0x154   : > { %992 = vsinq.f32 %v809_v0 }
 0x155   : > { %v987_v2 = vpop.eup %986 }
 0x156   : > { %v989_v4 = vpop.eup %988  ;;  %v717_v33 = vxor.u32 2147483648, %v987_v2 }
 0x157   : > { %v714_v5 = vxor.u32 2147483648, %v989_v4 }
 0x158   : > { %v718_v6 = vsel %vm716_vm4, %v717_v33, %v989_v4 }
 0x159   : > { %v715_v7 = vsel %vm713_vm5, %v987_v2, %v714_v5 }
 0x15a   : > { %v719_v8 = vsel %vm712_vm6, %v715_v7, %v718_v6 }
 0x15b   : > { %v720_v9 = vsel %vm709_vm7, nan, %v719_v8 }
 0x15c   : > { %825 = vst [vmem:[%s134_s30] sm:$0xff] %v720_v9 }
 0x15d   : > { %v991_v11 = vpop.eup %990 }
 0x15e   : > { %v993_v12 = vpop.eup %992  ;;  %v821_v13 = vxor.u32 2147483648, %v991_v11 }
 0x15f   : > { %v818_v14 = vxor.u32 2147483648, %v993_v12 }
 0x160   : > { %v822_v15 = vsel %vm820_vm8, %v821_v13, %v993_v12 }
 0x161   : > { %v819_v16 = vsel %vm817_vm9, %v991_v11, %v818_v14 }
 0x162   : > { %v823_v25 = vsel %vm816_vm10, %v819_v16, %v822_v15 }
 0x163   : > { %v824_v17 = vsel %vm813_vm11, nan, %v823_v25 }
 0x164   : > { %826 = vst [vmem:[%s134_s30 + $0x8] sm:$0xff] %v824_v17 }
 0x165   : > { %1007 = shalt.err (!%p1004_p3)
}
 0x166   : > { %s1008_s21 = scalar_lea.hbm %s1214_s7, 256  ;;  %s1012_s24 = scalar_lea.hbm %s1260_s2, 512 }
 0x167   : > { %p1009_p4 = scmp.ne.s32.totalorder %s1214_s7, %s1008_s21  ;;  %p1013_p9 = scmp.lt.u32.totalorder %s1214_s7, %s1260_s2 }
 0x168   : > { %p1014_p10 = scmp.lt.u32.totalorder %s1012_s24, %s1008_s21  ;;  %p1016_p12 = scmp.lt.u32.totalorder %s1008_s21, %s1214_s7 }
 0x169   : > { %p1010_p7 = pnand %p1009_p4, %p1119_p5 }
 0x16a   : > { %p1015_p11 = por %p1014_p10, %p1013_p9 }
 0x16b   : > { %p1011_p8 = pneg %p1010_p7 }
 0x16c   : > { %p1017_p13 = por %p1016_p12, %p1015_p11 }
 0x16e   : > { %p1018_p0 = pnand %p1017_p13, %p1011_p8 }
 0x170   : > { %1021 = shalt.err (!%p1018_p0)
}
 0x171   : > { %939 = dma.vmem_to_hbm [thread:$0]  (%p1119_p5), %s1216_s4, 256, %s1214_s7, %s828_s8  }
 0x172 PF: > { %p945_p1 = scmp.ge.s32.totalorder %s1056_s12, 2  ;;  %s854_s27 = sand.u32 1, %s1044_s9  }
 0x173   : > { %s855_s28 = scalar_lea.sflag [#allocation3], %s854_s27 }
 0x174   : > { %p942_p2 = pnand %p945_p1, %p1123_p6 }
 0x176   : > { %1039 = dma.done.wait (!%p942_p2), %s855_s28, 256  }
 0x177   : > { %1041 = vsyncadd (!%p942_p2), %s855_s28, 4294967040  ;;  %p12_p3 = scmp.ge.s32.totalorder %s1106_s15, 4   ;;  %s1265_s9 = smov %s1048_s10 }
 0x178   : > { %s1266_s10 = smov %s1052_s11  ;;  %s1267_s11 = smov %s1117_s18 }
 0x179   : > { %s1268_s12 = smov %s1106_s15  ;;  %14 = sbr.rel (!%p12_p3) target bundleno = 3 (0x3), region = 63 }
 0x180   :  { %860 = vsyncpa [#allocation3], 1 }
 0x181   :  { %862 = vsyncpa [#allocation3 + $0x1], 1 }

</bundles_post_ra>
